<compile_context>
chip_gen: v5e
topology: v5e:2x2
jax: 0.10.0
libtpu: 0.0.40
codegen_flags: <defaults>
</compile_context>

<pallas_src>
import jax
import jax.numpy as jnp
from jax.experimental import pallas as pl
from jax.experimental.pallas import tpu as pltpu

# ---------------------------------------------------------------------------
# Synthetic, deterministic "config_defaults" (only shapes / mapping matter).
# 12 instruments, 4 families, instrument i belongs to family i // 3.
# ---------------------------------------------------------------------------
NUM_INSTRUMENTS = 12
NUM_FAMILIES = 4
INSTRUMENT_TO_FAMILY = [i // (NUM_INSTRUMENTS // NUM_FAMILIES) for i in range(NUM_INSTRUMENTS)]

# Static family -> instrument-index groups (what nn.Parameter(family_indices)
# encodes in the PyTorch module, frozen / requires_grad=False).
FAMILY_GROUPS = tuple(
    tuple(i for i in range(NUM_INSTRUMENTS) if INSTRUMENT_TO_FAMILY[i] == f)
    for f in range(NUM_FAMILIES)
)

LANES = 128
MAX_ROWS_PER_TILE = 512   # 512 sublane rows x 128 lanes = 65536 batch cols/step
MAX_CORES = 2             # v7x has 2 TensorCores; extra axis is harmless on v5e/v6e


def get_family_indices():
    """Float 0/1 mask [NUM_FAMILIES, NUM_INSTRUMENTS] (bool mask in torch)."""
    mask = jnp.zeros((NUM_FAMILIES, NUM_INSTRUMENTS), dtype=jnp.float32)
    for inst in range(NUM_INSTRUMENTS):
        mask = mask.at[INSTRUMENT_TO_FAMILY[inst], inst].set(1.0)
    return mask


def _cdiv(a, b):
    return -(-a // b)


def _round_up(x, m):
    return _cdiv(x, m) * m


# ---------------------------------------------------------------------------
# Pallas kernel
# ---------------------------------------------------------------------------
def _make_kernel(family_groups, batch, rows_per_tile, tiles_per_core):
    cols_per_tile = rows_per_tile * LANES

    def kernel(pred_ref, tgt_ref, out_ref, acc_ref):
        # pred_ref / tgt_ref blocks: (NUM_INSTRUMENTS, rows_per_tile, 128)
        p = pl.program_id(0)   # core / partial-sum index ("parallel")
        t = pl.program_id(1)   # batch-tile index          ("arbitrary")

        @pl.when(t == 0)
        def _init():
            acc_ref[...] = jnp.zeros_like(acc_ref)

        # Global batch index of every (sublane, lane) element of this tile.
        # (Overhang tiles are clamped in the index_map; their columns land
        #  >= batch here, so the where-select drops them.)
        tile_idx = p * tiles_per_core + t
        r_iota = jax.lax.broadcasted_iota(jnp.int32, (rows_per_tile, LANES), 0)
        l_iota = jax.lax.broadcasted_iota(jnp.int32, (rows_per_tile, LANES), 1)
        col = tile_idx * cols_per_tile + r_iota * LANES + l_iota
        valid = col < batch

        tile_loss = None
        for insts in family_groups:            # static & tiny -> fully unrolled
            # Family max-pool: element-wise maximum over dense (rows, 128)
            # per-instrument planes -> pure VPU, full vreg occupancy.
            x = pred_ref[insts[0]].astype(jnp.float32)
            y = tgt_ref[insts[0]].astype(jnp.float32)
            for j in insts[1:]:
                x = jnp.maximum(x, pred_ref[j].astype(jnp.float32))
                y = jnp.maximum(y, tgt_ref[j].astype(jnp.float32))
            # Numerically stable BCE-with-logits (same formula PyTorch uses).
            per = jnp.maximum(x, 0.0) - x * y + jnp.log1p(jnp.exp(-jnp.abs(x)))
            tile_loss = per if tile_loss is None else tile_loss + per  # (rows, 128)

        # Pure element-wise accumulate; the cross-lane/sublane reduction is
        # deferred to the epilogue below.
        acc_ref[...] += jnp.where(valid, tile_loss, 0.0)

        @pl.when(t == tiles_per_core - 1)
        def _finalize():
            s = jnp.sum(acc_ref[...], axis=1, keepdims=True)   # (rows, 1)
            s = jnp.sum(s, axis=0, keepdims=True)              # (1, 1)
            out_ref[0] = s                                      # per-core partial sum

    return kernel


@jax.jit
def instrument_family_loss(prediction_logits, targets):
    B, I = prediction_logits.shape

    # TODO(synk): produce logits/targets directly in [I, B] (or bf16) upstream;
    # the transpose below is one extra HBM pass over each tensor that a
    # layout-aware producer would avoid entirely.
    b_pad = _round_up(B, LANES)
    if b_pad != B:
        pad = ((0, b_pad - B), (0, 0))
        prediction_logits = jnp.pad(prediction_logits, pad)
        targets = jnp.pad(targets, pad)
    n_rows = b_pad // LANES

    # Sublane+lane dense layout: [I, n_rows, 128] (batch on sublanes AND lanes).
    pred_t = prediction_logits.T.reshape(I, n_rows, LANES)
    tgt_t = targets.T.reshape(I, n_rows, LANES)

    rows_per_tile = min(MAX_ROWS_PER_TILE, n_rows)
    n_tiles = _cdiv(n_rows, rows_per_tile)
    n_cores = MAX_CORES if n_tiles >= MAX_CORES else 1
    tiles_per_core = _cdiv(n_tiles, n_cores)

    def in_index_map(p, t):
        # Clamp overhang tiles (when n_tiles is not a multiple of n_cores);
        # their contribution is masked out inside the kernel.
        tile_idx = jnp.minimum(p * tiles_per_core + t, n_tiles - 1)
        return (0, tile_idx, 0)

    kernel = _make_kernel(FAMILY_GROUPS, B, rows_per_tile, tiles_per_core)

    partials = pl.pallas_call(
        kernel,
        out_shape=jax.ShapeDtypeStruct((n_cores, 1, 1), jnp.float32),
        grid_spec=pltpu.PrefetchScalarGridSpec(
            num_scalar_prefetch=0,
            grid=(n_cores, tiles_per_core),
            in_specs=[
                pl.BlockSpec((I, rows_per_tile, LANES), in_index_map),
                pl.BlockSpec((I, rows_per_tile, LANES), in_index_map),
            ],
            out_specs=pl.BlockSpec((1, 1, 1), lambda p, t: (p, 0, 0)),
            scratch_shapes=[pltpu.VMEM((rows_per_tile, LANES), jnp.float32)],
        ),
        compiler_params=pltpu.CompilerParams(
            # Leading axis: one partial sum per TensorCore (2 TCs on v7x);
            # inner axis: carried accumulator over batch tiles.
            dimension_semantics=("parallel", "arbitrary"),
            vmem_limit_bytes=32 * 1024 * 1024,
        ),
    )(pred_t, tgt_t)

    # BCEWithLogitsLoss 'mean' over the [B, num_families] pooled matrix,
    # then .mean(-1, keepdim=True) on the scalar -> shape (1,).
    return (jnp.sum(partials) / jnp.float32(B * NUM_FAMILIES)).reshape(1)


# ---------------------------------------------------------------------------
# Pure-JAX reference (mirrors the PyTorch forward) for a correctness check.
# ---------------------------------------------------------------------------
def _reference(prediction_logits, targets, family_mask):
    neg_big = -1e30
    m = family_mask[None, :, :] > 0                                            # [1, F, I]
    pf = jnp.max(jnp.where(m, prediction_logits[:, None, :], neg_big), -1)     # [B, F]
    tf = jnp.max(jnp.where(m, targets[:, None, :], neg_big), -1)               # [B, F]
    l = jnp.maximum(pf, 0.0) - pf * tf + jnp.log1p(jnp.exp(-jnp.abs(pf)))
    return jnp.mean(l).reshape(1)


if __name__ == "__main__":
    key = jax.random.PRNGKey(0)
    k_pred, k_tgt = jax.random.split(key)

    B = 8
    prediction_logits = jax.random.normal(k_pred, (B, NUM_INSTRUMENTS), dtype=jnp.float32)
    targets = (jax.random.uniform(k_tgt, (B, NUM_INSTRUMENTS)) > 0.5).astype(jnp.float32)

    out = instrument_family_loss(prediction_logits, targets)
    out = jax.block_until_ready(out)

    ref = _reference(prediction_logits, targets, get_family_indices())
    assert out.shape == (1,), out.shape
    assert jnp.allclose(out, ref, rtol=1e-5, atol=1e-6), (out, ref)
    print("KERNEL_OK")
</pallas_src>

<mosaic_0001>
module attributes {stable_mosaic.version = 11 : i64} {
  func.func @kernel(%arg0: i32, %arg1: i32, %arg2: memref<12x1x128xf32, #tpu.memory_space<vmem>>, %arg3: memref<12x1x128xf32, #tpu.memory_space<vmem>>, %arg4: memref<1x1x1xf32, #tpu.memory_space<vmem>>, %arg5: memref<1x128xf32, #tpu.memory_space<vmem>>) attributes {dimension_semantics = [#tpu.dimension_semantics<parallel>, #tpu.dimension_semantics<arbitrary>], iteration_bounds = array<i64: 1, 1>, scalar_prefetch = 0 : i64, scratch_operands = 1 : i64, tpu.core_type = #tpu.core_type<tc>, window_params = [{transform_indices = @transform_0, window_bounds = array<i64: 12, 1, 128>}, {transform_indices = @transform_1, window_bounds = array<i64: 12, 1, 128>}, {transform_indices = @transform_2, window_bounds = array<i64: 1, 1, 1>}]} {
    %c0_i32 = arith.constant 0 : i32
    %0 = arith.cmpi eq, %arg1, %c0_i32 : i32
    %1 = arith.extui %0 : i1 to i32
    %c0_i32_0 = arith.constant 0 : i32
    %2 = arith.cmpi ne, %1, %c0_i32_0 : i32
    scf.if %2 {
      %cst_76 = arith.constant 0.000000e+00 : f32
      %130 = vector.broadcast %cst_76 : f32 to vector<1x128xf32>
      %c0_77 = arith.constant 0 : index
      %c0_78 = arith.constant 0 : index
      %131 = vector.load %arg5[%c0_77, %c0_78] : memref<1x128xf32, #tpu.memory_space<vmem>>, vector<1x128xf32>
      tpu.vector_store %arg5[%c0_77, %c0_78], %130 {strides = array<i32>} : memref<1x128xf32, #tpu.memory_space<vmem>>, vector<1x128xf32>,
    } else {
    }
    %c1_i32 = arith.constant 1 : i32
    %3 = arith.muli %arg0, %c1_i32 : i32
    %4 = arith.addi %3, %arg1 : i32
    %5 = tpu.iota {dimensions = array<i32: 0>} : vector<1x128xi32>
    %6 = tpu.iota {dimensions = array<i32: 1>} : vector<1x128xi32>
    %c128_i32 = arith.constant 128 : i32
    %7 = arith.muli %4, %c128_i32 : i32
    %c128_i32_1 = arith.constant 128 : i32
    %8 = vector.broadcast %c128_i32_1 : i32 to vector<1x128xi32>
    %9 = arith.muli %5, %8 : vector<1x128xi32>
    %10 = vector.broadcast %7 : i32 to vector<1x128xi32>
    %11 = arith.addi %10, %9 : vector<1x128xi32>
    %12 = arith.addi %11, %6 : vector<1x128xi32>
    %c8_i32 = arith.constant 8 : i32
    %13 = vector.broadcast %c8_i32 : i32 to vector<1x128xi32>
    %14 = arith.cmpi slt, %12, %13 : vector<1x128xi32>
    %c0 = arith.constant 0 : index
    %c0_2 = arith.constant 0 : index
    %c0_3 = arith.constant 0 : index
    %15 = vector.load %arg2[%c0, %c0_2, %c0_3] : memref<12x1x128xf32, #tpu.memory_space<vmem>>, vector<1x1x128xf32>
    %16 = vector.shape_cast %15 : vector<1x1x128xf32> to vector<1x128xf32>
    %c0_4 = arith.constant 0 : index
    %c0_5 = arith.constant 0 : index
    %c0_6 = arith.constant 0 : index
    %17 = vector.load %arg3[%c0_4, %c0_5, %c0_6] : memref<12x1x128xf32, #tpu.memory_space<vmem>>, vector<1x1x128xf32>
    %18 = vector.shape_cast %17 : vector<1x1x128xf32> to vector<1x128xf32>
    %c1 = arith.constant 1 : index
    %c0_7 = arith.constant 0 : index
    %c0_8 = arith.constant 0 : index
    %19 = vector.load %arg2[%c1, %c0_7, %c0_8] : memref<12x1x128xf32, #tpu.memory_space<vmem>>, vector<1x1x128xf32>
    %20 = vector.shape_cast %19 : vector<1x1x128xf32> to vector<1x128xf32>
    %21 = arith.maximumf %16, %20 : vector<1x128xf32>
    %c1_9 = arith.constant 1 : index
    %c0_10 = arith.constant 0 : index
    %c0_11 = arith.constant 0 : index
    %22 = vector.load %arg3[%c1_9, %c0_10, %c0_11] : memref<12x1x128xf32, #tpu.memory_space<vmem>>, vector<1x1x128xf32>
    %23 = vector.shape_cast %22 : vector<1x1x128xf32> to vector<1x128xf32>
    %24 = arith.maximumf %18, %23 : vector<1x128xf32>
    %c2 = arith.constant 2 : index
    %c0_12 = arith.constant 0 : index
    %c0_13 = arith.constant 0 : index
    %25 = vector.load %arg2[%c2, %c0_12, %c0_13] : memref<12x1x128xf32, #tpu.memory_space<vmem>>, vector<1x1x128xf32>
    %26 = vector.shape_cast %25 : vector<1x1x128xf32> to vector<1x128xf32>
    %27 = arith.maximumf %21, %26 : vector<1x128xf32>
    %c2_14 = arith.constant 2 : index
    %c0_15 = arith.constant 0 : index
    %c0_16 = arith.constant 0 : index
    %28 = vector.load %arg3[%c2_14, %c0_15, %c0_16] : memref<12x1x128xf32, #tpu.memory_space<vmem>>, vector<1x1x128xf32>
    %29 = vector.shape_cast %28 : vector<1x1x128xf32> to vector<1x128xf32>
    %30 = arith.maximumf %24, %29 : vector<1x128xf32>
    %cst = arith.constant 0.000000e+00 : f32
    %31 = vector.broadcast %cst : f32 to vector<1x128xf32>
    %32 = arith.maximumf %27, %31 : vector<1x128xf32>
    %33 = arith.mulf %27, %30 : vector<1x128xf32>
    %34 = arith.subf %32, %33 : vector<1x128xf32>
    %35 = math.absf %27 : vector<1x128xf32>
    %cst_17 = arith.constant 0.000000e+00 : f32
    %36 = vector.broadcast %cst_17 : f32 to vector<1x128xf32>
    %37 = arith.subf %36, %35 : vector<1x128xf32>
    %38 = math.exp %37 : vector<1x128xf32>
    %39 = math.log1p %38 : vector<1x128xf32>
    %40 = arith.addf %34, %39 : vector<1x128xf32>
    %c3 = arith.constant 3 : index
    %c0_18 = arith.constant 0 : index
    %c0_19 = arith.constant 0 : index
    %41 = vector.load %arg2[%c3, %c0_18, %c0_19] : memref<12x1x128xf32, #tpu.memory_space<vmem>>, vector<1x1x128xf32>
    %42 = vector.shape_cast %41 : vector<1x1x128xf32> to vector<1x128xf32>
    %c3_20 = arith.constant 3 : index
    %c0_21 = arith.constant 0 : index
    %c0_22 = arith.constant 0 : index
    %43 = vector.load %arg3[%c3_20, %c0_21, %c0_22] : memref<12x1x128xf32, #tpu.memory_space<vmem>>, vector<1x1x128xf32>
    %44 = vector.shape_cast %43 : vector<1x1x128xf32> to vector<1x128xf32>
    %c4 = arith.constant 4 : index
    %c0_23 = arith.constant 0 : index
    %c0_24 = arith.constant 0 : index
    %45 = vector.load %arg2[%c4, %c0_23, %c0_24] : memref<12x1x128xf32, #tpu.memory_space<vmem>>, vector<1x1x128xf32>
    %46 = vector.shape_cast %45 : vector<1x1x128xf32> to vector<1x128xf32>
    %47 = arith.maximumf %42, %46 : vector<1x128xf32>
    %c4_25 = arith.constant 4 : index
    %c0_26 = arith.constant 0 : index
    %c0_27 = arith.constant 0 : index
    %48 = vector.load %arg3[%c4_25, %c0_26, %c0_27] : memref<12x1x128xf32, #tpu.memory_space<vmem>>, vector<1x1x128xf32>
    %49 = vector.shape_cast %48 : vector<1x1x128xf32> to vector<1x128xf32>
    %50 = arith.maximumf %44, %49 : vector<1x128xf32>
    %c5 = arith.constant 5 : index
    %c0_28 = arith.constant 0 : index
    %c0_29 = arith.constant 0 : index
    %51 = vector.load %arg2[%c5, %c0_28, %c0_29] : memref<12x1x128xf32, #tpu.memory_space<vmem>>, vector<1x1x128xf32>
    %52 = vector.shape_cast %51 : vector<1x1x128xf32> to vector<1x128xf32>
    %53 = arith.maximumf %47, %52 : vector<1x128xf32>
    %c5_30 = arith.constant 5 : index
    %c0_31 = arith.constant 0 : index
    %c0_32 = arith.constant 0 : index
    %54 = vector.load %arg3[%c5_30, %c0_31, %c0_32] : memref<12x1x128xf32, #tpu.memory_space<vmem>>, vector<1x1x128xf32>
    %55 = vector.shape_cast %54 : vector<1x1x128xf32> to vector<1x128xf32>
    %56 = arith.maximumf %50, %55 : vector<1x128xf32>
    %cst_33 = arith.constant 0.000000e+00 : f32
    %57 = vector.broadcast %cst_33 : f32 to vector<1x128xf32>
    %58 = arith.maximumf %53, %57 : vector<1x128xf32>
    %59 = arith.mulf %53, %56 : vector<1x128xf32>
    %60 = arith.subf %58, %59 : vector<1x128xf32>
    %61 = math.absf %53 : vector<1x128xf32>
    %cst_34 = arith.constant 0.000000e+00 : f32
    %62 = vector.broadcast %cst_34 : f32 to vector<1x128xf32>
    %63 = arith.subf %62, %61 : vector<1x128xf32>
    %64 = math.exp %63 : vector<1x128xf32>
    %65 = math.log1p %64 : vector<1x128xf32>
    %66 = arith.addf %60, %65 : vector<1x128xf32>
    %67 = arith.addf %40, %66 : vector<1x128xf32>
    %c6 = arith.constant 6 : index
    %c0_35 = arith.constant 0 : index
    %c0_36 = arith.constant 0 : index
    %68 = vector.load %arg2[%c6, %c0_35, %c0_36] : memref<12x1x128xf32, #tpu.memory_space<vmem>>, vector<1x1x128xf32>
    %69 = vector.shape_cast %68 : vector<1x1x128xf32> to vector<1x128xf32>
    %c6_37 = arith.constant 6 : index
    %c0_38 = arith.constant 0 : index
    %c0_39 = arith.constant 0 : index
    %70 = vector.load %arg3[%c6_37, %c0_38, %c0_39] : memref<12x1x128xf32, #tpu.memory_space<vmem>>, vector<1x1x128xf32>
    %71 = vector.shape_cast %70 : vector<1x1x128xf32> to vector<1x128xf32>
    %c7 = arith.constant 7 : index
    %c0_40 = arith.constant 0 : index
    %c0_41 = arith.constant 0 : index
    %72 = vector.load %arg2[%c7, %c0_40, %c0_41] : memref<12x1x128xf32, #tpu.memory_space<vmem>>, vector<1x1x128xf32>
    %73 = vector.shape_cast %72 : vector<1x1x128xf32> to vector<1x128xf32>
    %74 = arith.maximumf %69, %73 : vector<1x128xf32>
    %c7_42 = arith.constant 7 : index
    %c0_43 = arith.constant 0 : index
    %c0_44 = arith.constant 0 : index
    %75 = vector.load %arg3[%c7_42, %c0_43, %c0_44] : memref<12x1x128xf32, #tpu.memory_space<vmem>>, vector<1x1x128xf32>
    %76 = vector.shape_cast %75 : vector<1x1x128xf32> to vector<1x128xf32>
    %77 = arith.maximumf %71, %76 : vector<1x128xf32>
    %c8 = arith.constant 8 : index
    %c0_45 = arith.constant 0 : index
    %c0_46 = arith.constant 0 : index
    %78 = vector.load %arg2[%c8, %c0_45, %c0_46] : memref<12x1x128xf32, #tpu.memory_space<vmem>>, vector<1x1x128xf32>
    %79 = vector.shape_cast %78 : vector<1x1x128xf32> to vector<1x128xf32>
    %80 = arith.maximumf %74, %79 : vector<1x128xf32>
    %c8_47 = arith.constant 8 : index
    %c0_48 = arith.constant 0 : index
    %c0_49 = arith.constant 0 : index
    %81 = vector.load %arg3[%c8_47, %c0_48, %c0_49] : memref<12x1x128xf32, #tpu.memory_space<vmem>>, vector<1x1x128xf32>
    %82 = vector.shape_cast %81 : vector<1x1x128xf32> to vector<1x128xf32>
    %83 = arith.maximumf %77, %82 : vector<1x128xf32>
    %cst_50 = arith.constant 0.000000e+00 : f32
    %84 = vector.broadcast %cst_50 : f32 to vector<1x128xf32>
    %85 = arith.maximumf %80, %84 : vector<1x128xf32>
    %86 = arith.mulf %80, %83 : vector<1x128xf32>
    %87 = arith.subf %85, %86 : vector<1x128xf32>
    %88 = math.absf %80 : vector<1x128xf32>
    %cst_51 = arith.constant 0.000000e+00 : f32
    %89 = vector.broadcast %cst_51 : f32 to vector<1x128xf32>
    %90 = arith.subf %89, %88 : vector<1x128xf32>
    %91 = math.exp %90 : vector<1x128xf32>
    %92 = math.log1p %91 : vector<1x128xf32>
    %93 = arith.addf %87, %92 : vector<1x128xf32>
    %94 = arith.addf %67, %93 : vector<1x128xf32>
    %c9 = arith.constant 9 : index
    %c0_52 = arith.constant 0 : index
    %c0_53 = arith.constant 0 : index
    %95 = vector.load %arg2[%c9, %c0_52, %c0_53] : memref<12x1x128xf32, #tpu.memory_space<vmem>>, vector<1x1x128xf32>
    %96 = vector.shape_cast %95 : vector<1x1x128xf32> to vector<1x128xf32>
    %c9_54 = arith.constant 9 : index
    %c0_55 = arith.constant 0 : index
    %c0_56 = arith.constant 0 : index
    %97 = vector.load %arg3[%c9_54, %c0_55, %c0_56] : memref<12x1x128xf32, #tpu.memory_space<vmem>>, vector<1x1x128xf32>
    %98 = vector.shape_cast %97 : vector<1x1x128xf32> to vector<1x128xf32>
    %c10 = arith.constant 10 : index
    %c0_57 = arith.constant 0 : index
    %c0_58 = arith.constant 0 : index
    %99 = vector.load %arg2[%c10, %c0_57, %c0_58] : memref<12x1x128xf32, #tpu.memory_space<vmem>>, vector<1x1x128xf32>
    %100 = vector.shape_cast %99 : vector<1x1x128xf32> to vector<1x128xf32>
    %101 = arith.maximumf %96, %100 : vector<1x128xf32>
    %c10_59 = arith.constant 10 : index
    %c0_60 = arith.constant 0 : index
    %c0_61 = arith.constant 0 : index
    %102 = vector.load %arg3[%c10_59, %c0_60, %c0_61] : memref<12x1x128xf32, #tpu.memory_space<vmem>>, vector<1x1x128xf32>
    %103 = vector.shape_cast %102 : vector<1x1x128xf32> to vector<1x128xf32>
    %104 = arith.maximumf %98, %103 : vector<1x128xf32>
    %c11 = arith.constant 11 : index
    %c0_62 = arith.constant 0 : index
    %c0_63 = arith.constant 0 : index
    %105 = vector.load %arg2[%c11, %c0_62, %c0_63] : memref<12x1x128xf32, #tpu.memory_space<vmem>>, vector<1x1x128xf32>
    %106 = vector.shape_cast %105 : vector<1x1x128xf32> to vector<1x128xf32>
    %107 = arith.maximumf %101, %106 : vector<1x128xf32>
    %c11_64 = arith.constant 11 : index
    %c0_65 = arith.constant 0 : index
    %c0_66 = arith.constant 0 : index
    %108 = vector.load %arg3[%c11_64, %c0_65, %c0_66] : memref<12x1x128xf32, #tpu.memory_space<vmem>>, vector<1x1x128xf32>
    %109 = vector.shape_cast %108 : vector<1x1x128xf32> to vector<1x128xf32>
    %110 = arith.maximumf %104, %109 : vector<1x128xf32>
    %cst_67 = arith.constant 0.000000e+00 : f32
    %111 = vector.broadcast %cst_67 : f32 to vector<1x128xf32>
    %112 = arith.maximumf %107, %111 : vector<1x128xf32>
    %113 = arith.mulf %107, %110 : vector<1x128xf32>
    %114 = arith.subf %112, %113 : vector<1x128xf32>
    %115 = math.absf %107 : vector<1x128xf32>
    %cst_68 = arith.constant 0.000000e+00 : f32
    %116 = vector.broadcast %cst_68 : f32 to vector<1x128xf32>
    %117 = arith.subf %116, %115 : vector<1x128xf32>
    %118 = math.exp %117 : vector<1x128xf32>
    %119 = math.log1p %118 : vector<1x128xf32>
    %120 = arith.addf %114, %119 : vector<1x128xf32>
    %121 = arith.addf %94, %120 : vector<1x128xf32>
    %c0_69 = arith.constant 0 : index
    %c0_70 = arith.constant 0 : index
    %122 = vector.load %arg5[%c0_69, %c0_70] : memref<1x128xf32, #tpu.memory_space<vmem>>, vector<1x128xf32>
    %cst_71 = arith.constant 0.000000e+00 : f32
    %123 = vector.broadcast %cst_71 : f32 to vector<1x128xf32>
    %124 = arith.select %14, %121, %123 : vector<1x128xi1>, vector<1x128xf32>
    %125 = arith.addf %122, %124 : vector<1x128xf32>
    %c0_72 = arith.constant 0 : index
    %c0_73 = arith.constant 0 : index
    %126 = vector.load %arg5[%c0_72, %c0_73] : memref<1x128xf32, #tpu.memory_space<vmem>>, vector<1x128xf32>
    tpu.vector_store %arg5[%c0_72, %c0_73], %125 {strides = array<i32>} : memref<1x128xf32, #tpu.memory_space<vmem>>, vector<1x128xf32>,
    %c0_i32_74 = arith.constant 0 : i32
    %127 = arith.cmpi eq, %arg1, %c0_i32_74 : i32
    %128 = arith.extui %127 : i1 to i32
    %c0_i32_75 = arith.constant 0 : i32
    %129 = arith.cmpi ne, %128, %c0_i32_75 : i32
    scf.if %129 {
      %c0_76 = arith.constant 0 : index
      %c0_77 = arith.constant 0 : index
      %130 = vector.load %arg5[%c0_76, %c0_77] : memref<1x128xf32, #tpu.memory_space<vmem>>, vector<1x128xf32>
      %cst_78 = arith.constant dense<0.000000e+00> : vector<1xf32>
      %131 = vector.multi_reduction <add>, %130, %cst_78 [1] : vector<1x128xf32> to vector<1xf32>
      %132 = vector.shape_cast %131 : vector<1xf32> to vector<1x1xf32>
      %cst_79 = arith.constant dense<0.000000e+00> : vector<1xf32>
      %133 = vector.multi_reduction <add>, %132, %cst_79 [0] : vector<1x1xf32> to vector<1xf32>
      %134 = vector.shape_cast %133 : vector<1xf32> to vector<1x1xf32>
      %c0_80 = arith.constant 0 : index
      %c0_81 = arith.constant 0 : index
      %c0_82 = arith.constant 0 : index
      %135 = vector.load %arg4[%c0_80, %c0_81, %c0_82] : memref<1x1x1xf32, #tpu.memory_space<vmem>>, vector<1x1x1xf32>
      %136 = vector.shape_cast %135 : vector<1x1x1xf32> to vector<1x1xf32>
      %137 = vector.shape_cast %134 : vector<1x1xf32> to vector<1x1x1xf32>
      tpu.vector_store %arg4[%c0_80, %c0_81, %c0_82], %137 {strides = array<i32>} : memref<1x1x1xf32, #tpu.memory_space<vmem>>, vector<1x1x1xf32>,
    } else {
    }
    return
  }
  func.func @transform_0(%arg0: i32, %arg1: i32) -> (i32, i32, i32) {
    %c1_i32 = arith.constant 1 : i32
    %0 = arith.muli %arg0, %c1_i32 : i32
    %1 = arith.addi %0, %arg1 : i32
    %c0_i32 = arith.constant 0 : i32
    %2 = arith.minsi %1, %c0_i32 : i32
    %c0_i32_0 = arith.constant 0 : i32
    %c0_i32_1 = arith.constant 0 : i32
    %c0_i32_2 = arith.constant 0 : i32
    return %c0_i32_0, %2, %c0_i32_1 : i32, i32, i32
  }
  func.func @transform_1(%arg0: i32, %arg1: i32) -> (i32, i32, i32) {
    %c1_i32 = arith.constant 1 : i32
    %0 = arith.muli %arg0, %c1_i32 : i32
    %1 = arith.addi %0, %arg1 : i32
    %c0_i32 = arith.constant 0 : i32
    %2 = arith.minsi %1, %c0_i32 : i32
    %c0_i32_0 = arith.constant 0 : i32
    %c0_i32_1 = arith.constant 0 : i32
    %c0_i32_2 = arith.constant 0 : i32
    return %c0_i32_0, %2, %c0_i32_1 : i32, i32, i32
  }
  func.func @transform_2(%arg0: i32, %arg1: i32) -> (i32, i32, i32) {
    %c0_i32 = arith.constant 0 : i32
    %c0_i32_0 = arith.constant 0 : i32
    %c0_i32_1 = arith.constant 0 : i32
    return %arg0, %c0_i32, %c0_i32_0 : i32, i32, i32
  }
}

</mosaic_0001>

<bundles_post_ra>
// kernel: instrument_family_loss.1
= control target key start
LH: loop header
LB: loop body
LE: loop exit
PB: predicated region body
PF: predicated region fallthrough
CT: control target
= control target key end

     0   :  { %v312_v1 = vmov 0.0   ;;  %s430_s0 = inlined_call_operand.vmem [shape: f32[12,1,128], index: 0, kind: input, shape index: {}]   ;;  %s431_s1 = inlined_call_operand.vmem [shape: f32[12,1,128], index: 1, kind: input, shape index: {}]   ;;  %s432_s2 = inlined_call_operand.hbm [shape: f32[1,1,1], index: 2, kind: output, shape index: {}]  }
   0x1   :  { %v76_v0 = vld [vmem:[%s430_s0] sm:$0x1]  ;;  %64 = vst [vmem:[#allocation2] sm:$0x1] %v312_v1  ;;  %v246_v2 = vld [vmem:[%s430_s0 + $0x1] sm:$0x1] }
   0x2   :  { %v80_v3 = vmax.f32 %v76_v0, %v246_v2  ;;  %v248_v4 = vld [vmem:[%s430_s0 + $0x2] sm:$0x1]  ;;  %v250_v5 = vld [vmem:[%s430_s0 + $0x3] sm:$0x1]  ;;  %v252_v6 = vld [vmem:[%s430_s0 + $0x4] sm:$0x1] }
   0x3   :  { %v113_v8 = vmax.f32 %v250_v5, %v252_v6  ;;  %v254_v9 = vld [vmem:[%s430_s0 + $0x5] sm:$0x1]  ;;  %v256_v10 = vld [vmem:[%s430_s0 + $0x6] sm:$0x1]  ;;  %v258_v12 = vld [vmem:[%s430_s0 + $0x7] sm:$0x1] }
   0x4   :  { %v344_v7 = vmax.f32 %v80_v3, %v248_v4  ;;  %v147_v14 = vmax.f32 %v256_v10, %v258_v12  ;;  %v260_v15 = vld [vmem:[%s430_s0 + $0x8] sm:$0x1]  ;;  %v77_v16 = vld [vmem:[%s431_s1] sm:$0x1]  ;;  %v262_v18 = vld [vmem:[%s430_s0 + $0x9] sm:$0x1] }
   0x5   :  { %v356_v13 = vmax.f32 %v113_v8, %v254_v9  ;;  %v247_v19 = vld [vmem:[%s431_s1 + $0x1] sm:$0x1]  ;;  %v264_v22 = vld [vmem:[%s430_s0 + $0xa] sm:$0x1]  ;;  %v266_v25 = vld [vmem:[%s430_s0 + $0xb] sm:$0x1] }
   0x6   :  { %v93_v11 = vand.u32 2147483647, %v344_v7  ;;  %v371_v21 = vmax.f32 %v147_v14, %v260_v15  ;;  %v181_v24 = vmax.f32 %v262_v18, %v264_v22  ;;  %v83_v28 = vmax.f32 %v77_v16, %v247_v19 }
   0x7   :  { %v126_v20 = vand.u32 2147483647, %v356_v13 }
   0x8   :  { %v94_v17 = vsub.f32 0.0, %v93_v11  ;;  %v160_v27 = vand.u32 2147483647, %v371_v21  ;;  %v380_v29 = vmax.f32 %v181_v24, %v266_v25 }
   0x9   :  { %v127_v26 = vsub.f32 0.0, %v126_v20 }
   0xa   :  { %v95_v23 = vmul.f32 1.442695, %v94_v17 }
   0xc   :  { %270 = vpow2.f32 %v95_v23 }
   0xd   :  { %7 = vsyncpa [#allocation4], 0  ;;  %v249_v30 = vld [vmem:[%s431_s1 + $0x2] sm:$0x1]  ;;  %v128_v31 = vmul.f32 1.442695, %v127_v26  ;;  %v66_v45 = vlaneseq }
   0xe   :  { %v161_v32 = vsub.f32 0.0, %v160_v27  ;;  %v251_v33 = vld [vmem:[%s431_s1 + $0x3] sm:$0x1]  ;;  %v253_v34 = vld [vmem:[%s431_s1 + $0x4] sm:$0x1]  ;;  %v89_v37 = vmax.f32 %v83_v28, %v249_v30  ;;  %v90_v50 = vmax.f32 %v344_v7, 0.0 }
   0xf   :  { %v194_v35 = vand.u32 2147483647, %v380_v29  ;;  %272 = vpow2.f32 %v128_v31  ;;  %v116_v39 = vmax.f32 %v251_v33, %v253_v34  ;;  %v257_v40 = vld [vmem:[%s431_s1 + $0x6] sm:$0x1]  ;;  %v259_v41 = vld [vmem:[%s431_s1 + $0x7] sm:$0x1] }
  0x10   :  { %v162_v36 = vmul.f32 1.442695, %v161_v32  ;;  %v255_v43 = vld [vmem:[%s431_s1 + $0x5] sm:$0x1]  ;;  %v263_v48 = vld [vmem:[%s431_s1 + $0x9] sm:$0x1]  ;;  %v91_v51 = vmul.f32 %v89_v37, %v344_v7  ;;  %v150_v52 = vmax.f32 %v257_v40, %v259_v41 }
  0x11   :  { %v195_v38 = vsub.f32 0.0, %v194_v35  ;;  %v265_v49 = vld [vmem:[%s431_s1 + $0xa] sm:$0x1]  ;;  %v122_v54 = vmax.f32 %v116_v39, %v255_v43  ;;  %v261_v55 = vld [vmem:[%s431_s1 + $0x8] sm:$0x1]  ;;  %v67_v61 = vshrl.u32 %v66_v45, 7 }
  0x12   :  { %274 = vpow2.f32 %v162_v36  ;;  %v271_v42 = vpop.eup %270  ;;  %v184_v59 = vmax.f32 %v263_v48, %v265_v49  ;;  %v267_v63 = vld [vmem:[%s431_s1 + $0xb] sm:$0x1]  ;;  %v92_v0 = vsub.f32 %v90_v50, %v91_v51  ;;  %v156_v1 = vmax.f32 %v150_v52, %v261_v55  ;;  %v209_v50 = vld [vmem:[#allocation2] sm:$0x1]  ;;  %s313_s1 = smov [#allocation3]   ;;  %s231_s3 = sshll.u32 %s432_s2, 4  ;;  %s232_s3 = int_to_ptr.hbm [resolvable:$true] %s231_s3 }
  0x13   :  { %v196_v44 = vmul.f32 1.442695, %v195_v38  ;;  %v97_v46 = vadd.f32 1.0, %v271_v42  ;;  %v100_v47 = vmul.f32 -0.5, %v271_v42  ;;  %v103_v62 = vand.u32 2147483647, %v271_v42 }
  0x14   :  { %v123_v3 = vmax.f32 %v356_v13, 0.0  ;;  %v124_v4 = vmul.f32 %v122_v54, %v356_v13  ;;  %v190_v10 = vmax.f32 %v184_v59, %v267_v63  ;;  %v157_v18 = vmax.f32 %v371_v21, 0.0  ;;  %s229_s28 = sshll.u32 %s313_s1, 4  ;;  %s230_s28 = int_to_ptr.vmem [resolvable:$true] %s229_s28 }
  0x15   :  { %276 = vpow2.f32 %v196_v44  ;;  %v273_v53 = vpop.eup %272  ;;  %v101_v56 = vadd.f32 1.0, %v100_v47  ;;  %vm417_vm0 = vcmp.lt.f32.partialorder %v103_v62, 0.0004427343  ;;  %v158_v13 = vmul.f32 %v156_v1, %v371_v21 }
  0x16   :  { %278 = vlog2.f32 %v97_v46  ;;  %v130_v57 = vadd.f32 1.0, %v273_v53  ;;  %v133_v58 = vmul.f32 -0.5, %v273_v53  ;;  %v136_v9 = vand.u32 2147483647, %v273_v53 }
  0x17   :  { %v102_v8 = vmul.f32 %v271_v42, %v101_v56  ;;  %v69_v20 = vand.u32 127, %v66_v45  ;;  %v125_v22 = vsub.f32 %v123_v3, %v124_v4  ;;  %v191_v26 = vmax.f32 %v380_v29, 0.0 }
  0x18   :  { %v275_v60 = vpop.eup %274  ;;  %280 = vlog2.f32 %v130_v57  ;;  %v134_v5 = vadd.f32 1.0, %v133_v58  ;;  %vm137_vm1 = vcmp.lt.f32.partialorder %v136_v9, 0.0004427343  ;;  %v192_v31 = vmul.f32 %v190_v10, %v380_v29 }
  0x19   :  { %v164_v2 = vadd.f32 1.0, %v275_v60  ;;  %v167_v6 = vmul.f32 -0.5, %v275_v60  ;;  %v170_v19 = vand.u32 2147483647, %v275_v60  ;;  %v71_v21 = vmul.u32 128, %v67_v61 }
  0x1a   :  { %v135_v23 = vmul.f32 %v273_v53, %v134_v5  ;;  %v159_v35 = vsub.f32 %v157_v18, %v158_v13  ;;  %v193_v42 = vsub.f32 %v191_v26, %v192_v31  ;;  %vm217_vm5 = vcmask 1040384  }
  0x1b   :  { %v277_v7 = vpop.eup %276  ;;  %282 = vlog2.f32 %v164_v2  ;;  %v168_v14 = vadd.f32 1.0, %v167_v6  ;;  %vm171_vm2 = vcmp.lt.f32.partialorder %v170_v19, 0.0004427343  ;;  %v74_v43 = vadd.s32 %v71_v21, %v69_v20 }
  0x1c   :  { %v279_v11 = vpop.eup %278  ;;  %v198_v15 = vadd.f32 1.0, %v277_v7  ;;  %v201_v16 = vmul.f32 -0.5, %v277_v7  ;;  %v204_v32 = vand.u32 2147483647, %v277_v7  ;;  %vm222_vm6 = vcmask 0  }
  0x1d   :  { %v99_v17 = vmul.f32 0.6931472, %v279_v11  ;;  %v169_v30 = vmul.f32 %v275_v60, %v168_v14  ;;  %vm75_vm4 = vcmp.lt.s32.totalorder %v74_v43, 8 }
  0x1e   :  { %284 = vlog2.f32 %v198_v15  ;;  %v281_v24 = vpop.eup %280  ;;  %v202_v27 = vadd.f32 1.0, %v201_v16  ;;  %vm205_vm3 = vcmp.lt.f32.partialorder %v204_v32, 0.0004427343 }
  0x1f   :  { %v105_v25 = vsel %vm417_vm0, %v102_v8, %v99_v17  ;;  %v132_v28 = vmul.f32 0.6931472, %v281_v24 }
  0x20   :  { %v106_v34 = vadd.f32 %v105_v25, %v92_v0  ;;  %v203_v39 = vmul.f32 %v277_v7, %v202_v27 }
  0x21   :  { %v283_v33 = vpop.eup %282  ;;  %v138_v36 = vsel %vm137_vm1, %v135_v23, %v132_v28 }
  0x22   :  { %v166_v37 = vmul.f32 0.6931472, %v283_v33  ;;  %v139_v38 = vadd.f32 %v138_v36, %v125_v22 }
  0x24   :  { %v285_v40 = vpop.eup %284  ;;  %v172_v41 = vsel %vm171_vm2, %v169_v30, %v166_v37  ;;  %v140_v44 = vadd.f32 %v139_v38, %v106_v34 }
  0x25   :  { %v173_v45 = vadd.f32 %v172_v41, %v159_v35  ;;  %v200_v46 = vmul.f32 0.6931472, %v285_v40 }
  0x27   :  { %v174_v47 = vadd.f32 %v173_v45, %v140_v44  ;;  %v206_v29 = vsel %vm205_vm3, %v203_v39, %v200_v46 }
  0x28   :  { %v207_v48 = vadd.f32 %v206_v29, %v193_v42 }
  0x2a   :  { %v208_v49 = vadd.f32 %v207_v48, %v174_v47 }
  0x2c   :  { %v210_v51 = vsel %vm75_vm4, %v208_v49, 0.0 }
  0x2d   :  { %v211_v52 = vadd.f32 %v210_v51, %v209_v50 }
  0x2f   :  { %212 = vst [vmem:[#allocation2] sm:$0x1] %v211_v52 }
  0x36   :  { %v216_v53 = vld [vmem:[#allocation2] sm:$0x1] }
  0x37   :  { %v218_v54 = vsel %vm217_vm5, %v216_v53, 0.0 }
  0x38   :  { %219 = vadd.xlane.f32.xlu0 %v218_v54 }
  0xab   :  { %v220_v55 = vpop.xlane.xlu0 %219 }
  0xac   :  { %223 = vst.msk [vmem:[#allocation3] sm:$0x1] %vm222_vm6, %v220_v55 }
  0xad   :  { %234 = dma.vmem_to_hbm [thread:$0]  %s230_s28, 16, %s232_s3, [#allocation4]  }
  0xae   :  { %310 = dma.done.wait [#allocation4], 16  }
  0xaf   :  { %311 = vsyncadd [#allocation4], 4294967280 }
  0xb0   :  { %239 = vsyncpa [#allocation4], 1 }

</bundles_post_ra>
